<compile_context>
chip_gen: v7x
topology: tpu7x:2x2x1
jax: 0.10.0
libtpu: 0.0.40
codegen_flags: <defaults>
</compile_context>

<pallas_src>
import functools

import jax
import jax.numpy as jnp
from jax.experimental import pallas as pl
from jax.experimental.pallas import tpu as pltpu


# ---------------------------------------------------------------------------
# Kernel
# ---------------------------------------------------------------------------
def _double_conv_kernel(x_ref, a1_ref, b1_ref, a2_ref, b2_ref, o_ref,
                        xpad_ref, mid_ref, *, H, W, cin, cmid, cout):
    """Fused (conv3x3 + BN + ReLU) x 2 for one image, channel-packed layout.

    x_ref:   (1, H, W*cin)            input, packed [.., j*cin + ci]
    a1_ref:  (3, W*cin, W*cmid)       banded conv1 weights (BN scale folded,
                                      horizontal zero-padding folded into band)
    b1_ref:  (1, W*cmid)              conv1 folded BN shift (tiled over W)
    a2_ref:  (3, W*cmid, W*cout)      banded conv2 weights
    b2_ref:  (1, W*cout)              conv2 folded BN shift (tiled over W)
    o_ref:   (1, H, W*cout)           output, packed [.., j*cout + co]
    xpad_ref:(H+2, W*cin)   VMEM      input with 2 vertical halo rows
    mid_ref: (H+2, W*cmid)  VMEM      intermediate with 2 vertical halo rows
    """
    # Halo rows (0 and H+1) must be zero; the interior is fully overwritten
    # every grid step, so zero the scratch buffers only once.
    @pl.when(pl.program_id(0) == 0)
    def _():
        xpad_ref[...] = jnp.zeros_like(xpad_ref)
        mid_ref[...] = jnp.zeros_like(mid_ref)

    # ---- conv1 + BN shift + ReLU ------------------------------------------
    xpad_ref[pl.ds(1, H), :] = x_ref[0]            # lane-aligned full-row store

    acc = jnp.broadcast_to(b1_ref[...], (H, W * cmid)).astype(jnp.float32)
    for dy in range(3):                            # 3 MXU matmuls, one per row tap
        acc = acc + jnp.dot(xpad_ref[pl.ds(dy, H), :], a1_ref[dy],
                            preferred_element_type=jnp.float32)
    y1 = jnp.maximum(acc, 0.0)

    # ---- conv2 + BN shift + ReLU (intermediate never leaves VMEM) ----------
    mid_ref[pl.ds(1, H), :] = y1

    acc = jnp.broadcast_to(b2_ref[...], (H, W * cout)).astype(jnp.float32)
    for dy in range(3):
        acc = acc + jnp.dot(mid_ref[pl.ds(dy, H), :], a2_ref[dy],
                            preferred_element_type=jnp.float32)
    o_ref[0] = jnp.maximum(acc, 0.0).astype(o_ref.dtype)   # lane-dense store


# ---------------------------------------------------------------------------
# Wrapper helpers
# ---------------------------------------------------------------------------
def _banded_conv_weights(w_hwio, width):
    """Banded matmul weights for a 3x3 'same' conv in the channel-packed layout.

    w_hwio: (3, 3, cin, cout)
    returns A of shape (3, width*cin, width*cout) with
      A[dy, s*cin + ci, j*cout + co] = w_hwio[dy, s - j + 1, ci, co]
    for s = j + dx - 1 in range; out-of-range taps are omitted, which is
    exactly equivalent to zero padding along W.
    """
    _, _, cin, cout = w_hwio.shape
    mats = []
    for dy in range(3):
        a = jnp.zeros((width * cin, width * cout), w_hwio.dtype)
        for dx in range(3):
            sel = jnp.eye(width, k=1 - dx, dtype=w_hwio.dtype)   # [s, j] = 1 if s == j+dx-1
            a = a + jnp.kron(sel, w_hwio[dy, dx])                # (W*cin, W*cout)
        mats.append(a)
    return jnp.stack(mats, axis=0)


def _fold_bn(gamma, beta, running_mean, running_var, eps=1e-5):
    scale = gamma / jnp.sqrt(running_var + eps)
    shift = beta - running_mean * scale
    return scale, shift


def double_conv_packed(x_packed, a1, b1, a2, b2, *, H, W, cin, cmid, cout):
    """x_packed: (N, H, W*cin) f32 -> (N, H, W*cout) f32."""
    N = x_packed.shape[0]
    kernel = functools.partial(_double_conv_kernel, H=H, W=W,
                               cin=cin, cmid=cmid, cout=cout)
    return pl.pallas_call(
        kernel,
        out_shape=jax.ShapeDtypeStruct((N, H, W * cout), jnp.float32),
        grid_spec=pltpu.PrefetchScalarGridSpec(
            num_scalar_prefetch=0,
            grid=(N,),
            in_specs=[
                pl.BlockSpec((1, H, W * cin), lambda n: (n, 0, 0)),
                pl.BlockSpec((3, W * cin, W * cmid), lambda n: (0, 0, 0)),
                pl.BlockSpec((1, W * cmid), lambda n: (0, 0)),
                pl.BlockSpec((3, W * cmid, W * cout), lambda n: (0, 0, 0)),
                pl.BlockSpec((1, W * cout), lambda n: (0, 0)),
            ],
            out_specs=pl.BlockSpec((1, H, W * cout), lambda n: (n, 0, 0)),
            scratch_shapes=[
                pltpu.VMEM((H + 2, W * cin), jnp.float32),
                pltpu.VMEM((H + 2, W * cmid), jnp.float32),
            ],
        ),
        compiler_params=pltpu.CompilerParams(
            dimension_semantics=("parallel",),
            vmem_limit_bytes=32 * 1024 * 1024,
        ),
    )(x_packed, a1, b1, a2, b2)


def double_conv(x_nchw, params, eps=1e-5):
    """DoubleConv forward. x_nchw: (N, Cin, H, W) -> (N, Cout, H, W)."""
    N, cin, H, W = x_nchw.shape
    cmid = params["w1"].shape[0]
    cout = params["w2"].shape[0]

    # NCHW -> channel-packed (N, H, W*Cin).
    # TODO(synk): inside a full UNet keep activations in this packed layout
    # end-to-end so these entry/exit transposes (full HBM passes) disappear.
    x_packed = jnp.transpose(x_nchw, (0, 2, 3, 1)).reshape(N, H, W * cin)

    s1, b1 = _fold_bn(params["gamma1"], params["beta1"],
                      params["mean1"], params["var1"], eps)
    s2, b2 = _fold_bn(params["gamma2"], params["beta2"],
                      params["mean2"], params["var2"], eps)

    # OIHW -> HWIO, fold BN scale into conv weights, build banded weights.
    w1 = jnp.transpose(params["w1"], (2, 3, 1, 0)) * s1[None, None, None, :]
    w2 = jnp.transpose(params["w2"], (2, 3, 1, 0)) * s2[None, None, None, :]
    a1 = _banded_conv_weights(w1.astype(jnp.float32), W)
    a2 = _banded_conv_weights(w2.astype(jnp.float32), W)
    b1t = jnp.tile(b1, W).reshape(1, W * cmid).astype(jnp.float32)
    b2t = jnp.tile(b2, W).reshape(1, W * cout).astype(jnp.float32)

    y = double_conv_packed(x_packed, a1, b1t, a2, b2t,
                           H=H, W=W, cin=cin, cmid=cmid, cout=cout)
    return jnp.transpose(y.reshape(N, H, W, cout), (0, 3, 1, 2))


# ---------------------------------------------------------------------------
# Pure-JAX reference (for correctness check) and parameter init
# ---------------------------------------------------------------------------
def _double_conv_reference(x_nchw, params, eps=1e-5):
    def block(x, w, gamma, beta, mean, var):
        y = jax.lax.conv_general_dilated(
            x, w, window_strides=(1, 1), padding=((1, 1), (1, 1)),
            dimension_numbers=("NCHW", "OIHW", "NCHW"),
            precision=jax.lax.Precision.HIGHEST)
        scale = gamma / jnp.sqrt(var + eps)
        shift = beta - mean * scale
        y = y * scale[None, :, None, None] + shift[None, :, None, None]
        return jnp.maximum(y, 0.0)

    x = block(x_nchw, params["w1"], params["gamma1"], params["beta1"],
              params["mean1"], params["var1"])
    return block(x, params["w2"], params["gamma2"], params["beta2"],
                 params["mean2"], params["var2"])


def init_params(key, in_channels, out_channels):
    ks = jax.random.split(key, 10)
    return {
        "w1": 0.1 * jax.random.normal(ks[0], (out_channels, in_channels, 3, 3),
                                      jnp.float32),
        "gamma1": 1.0 + 0.1 * jax.random.normal(ks[1], (out_channels,), jnp.float32),
        "beta1": 0.1 * jax.random.normal(ks[2], (out_channels,), jnp.float32),
        "mean1": 0.1 * jax.random.normal(ks[3], (out_channels,), jnp.float32),
        "var1": jnp.abs(1.0 + 0.1 * jax.random.normal(ks[4], (out_channels,),
                                                      jnp.float32)),
        "w2": 0.1 * jax.random.normal(ks[5], (out_channels, out_channels, 3, 3),
                                      jnp.float32),
        "gamma2": 1.0 + 0.1 * jax.random.normal(ks[6], (out_channels,), jnp.float32),
        "beta2": 0.1 * jax.random.normal(ks[7], (out_channels,), jnp.float32),
        "mean2": 0.1 * jax.random.normal(ks[8], (out_channels,), jnp.float32),
        "var2": jnp.abs(1.0 + 0.1 * jax.random.normal(ks[9], (out_channels,),
                                                      jnp.float32)),
    }


if __name__ == "__main__":
    key = jax.random.PRNGKey(0)
    k_x, k_p = jax.random.split(key)

    N, Cin, Cout, H, W = 2, 4, 8, 16, 16
    x = jax.random.normal(k_x, (N, Cin, H, W), jnp.float32)   # NCHW like PyTorch
    params = init_params(k_p, Cin, Cout)

    fwd = jax.jit(functools.partial(double_conv, params=params))
    out = jax.block_until_ready(fwd(x))

    assert out.shape == (N, Cout, H, W)
    assert bool(jnp.all(out >= 0.0))          # ReLU output is non-negative
    assert bool(jnp.all(jnp.isfinite(out)))

    ref = _double_conv_reference(x, params)
    max_err = float(jnp.max(jnp.abs(out - ref)))
    assert bool(jnp.allclose(out, ref, atol=1e-4, rtol=1e-3)), max_err

    print("KERNEL_OK")
</pallas_src>

<mosaic_0001>
module attributes {stable_mosaic.version = 11 : i64} {
  func.func @_double_conv_kernel(%arg0: i32, %arg1: memref<1x16x64xf32, #tpu.memory_space<vmem>>, %arg2: memref<3x64x128xf32, #tpu.memory_space<vmem>>, %arg3: memref<1x128xf32, #tpu.memory_space<vmem>>, %arg4: memref<3x128x128xf32, #tpu.memory_space<vmem>>, %arg5: memref<1x128xf32, #tpu.memory_space<vmem>>, %arg6: memref<1x16x128xf32, #tpu.memory_space<vmem>>, %arg7: memref<18x64xf32, #tpu.memory_space<vmem>>, %arg8: memref<18x128xf32, #tpu.memory_space<vmem>>) attributes {dimension_semantics = [#tpu.dimension_semantics<parallel>], iteration_bounds = array<i64: 2>, scalar_prefetch = 0 : i64, scratch_operands = 2 : i64, tpu.core_type = #tpu.core_type<tc>, window_params = [{transform_indices = @transform_0, window_bounds = array<i64: 1, 16, 64>}, {pipeline_mode = #tpu.pipeline_mode<synchronous>, transform_indices = @transform_1, window_bounds = array<i64: 3, 64, 128>}, {pipeline_mode = #tpu.pipeline_mode<synchronous>, transform_indices = @transform_2, window_bounds = array<i64: 1, 128>}, {pipeline_mode = #tpu.pipeline_mode<synchronous>, transform_indices = @transform_3, window_bounds = array<i64: 3, 128, 128>}, {pipeline_mode = #tpu.pipeline_mode<synchronous>, transform_indices = @transform_4, window_bounds = array<i64: 1, 128>}, {transform_indices = @transform_5, window_bounds = array<i64: 1, 16, 128>}]} {
    %c0_i32 = arith.constant 0 : i32
    %0 = arith.cmpi eq, %arg0, %c0_i32 : i32
    %1 = arith.extui %0 : i1 to i32
    %c0_i32_0 = arith.constant 0 : i32
    %2 = arith.cmpi ne, %1, %c0_i32_0 : i32
    scf.if %2 {
      %cst_49 = arith.constant 0.000000e+00 : f32
      %50 = vector.broadcast %cst_49 : f32 to vector<18x64xf32>
      %c0_50 = arith.constant 0 : index
      %c0_51 = arith.constant 0 : index
      %51 = vector.load %arg7[%c0_50, %c0_51] : memref<18x64xf32, #tpu.memory_space<vmem>>, vector<18x64xf32>
      tpu.vector_store %arg7[%c0_50, %c0_51], %50 {strides = array<i32>} : memref<18x64xf32, #tpu.memory_space<vmem>>, vector<18x64xf32>,
      %cst_52 = arith.constant 0.000000e+00 : f32
      %52 = vector.broadcast %cst_52 : f32 to vector<18x128xf32>
      %c0_53 = arith.constant 0 : index
      %c0_54 = arith.constant 0 : index
      %53 = vector.load %arg8[%c0_53, %c0_54] : memref<18x128xf32, #tpu.memory_space<vmem>>, vector<18x128xf32>
      tpu.vector_store %arg8[%c0_53, %c0_54], %52 {strides = array<i32>} : memref<18x128xf32, #tpu.memory_space<vmem>>, vector<18x128xf32>,
    } else {
    }
    %c0 = arith.constant 0 : index
    %c0_1 = arith.constant 0 : index
    %c0_2 = arith.constant 0 : index
    %3 = vector.load %arg1[%c0, %c0_1, %c0_2] : memref<1x16x64xf32, #tpu.memory_space<vmem>>, vector<1x16x64xf32>
    %4 = vector.shape_cast %3 : vector<1x16x64xf32> to vector<16x64xf32>
    %c1 = arith.constant 1 : index
    %c0_3 = arith.constant 0 : index
    %5 = vector.load %arg7[%c1, %c0_3] : memref<18x64xf32, #tpu.memory_space<vmem>>, vector<16x64xf32>
    tpu.vector_store %arg7[%c1, %c0_3], %4 {strides = array<i32>} : memref<18x64xf32, #tpu.memory_space<vmem>>, vector<16x64xf32>,
    %c0_4 = arith.constant 0 : index
    %c0_5 = arith.constant 0 : index
    %6 = vector.load %arg3[%c0_4, %c0_5] : memref<1x128xf32, #tpu.memory_space<vmem>>, vector<1x128xf32>
    %7 = vector.shape_cast %6 : vector<1x128xf32> to vector<1x128xf32>
    %8 = vector.broadcast %7 : vector<1x128xf32> to vector<16x128xf32>
    %c0_6 = arith.constant 0 : index
    %c0_7 = arith.constant 0 : index
    %9 = vector.load %arg7[%c0_6, %c0_7] : memref<18x64xf32, #tpu.memory_space<vmem>>, vector<16x64xf32>
    %c0_8 = arith.constant 0 : index
    %c0_9 = arith.constant 0 : index
    %c0_10 = arith.constant 0 : index
    %10 = vector.load %arg2[%c0_8, %c0_9, %c0_10] : memref<3x64x128xf32, #tpu.memory_space<vmem>>, vector<1x64x128xf32>
    %11 = vector.shape_cast %10 : vector<1x64x128xf32> to vector<64x128xf32>
    %cst = arith.constant dense<0.000000e+00> : vector<16x128xf32>
    %12 = tpu.matmul %9, %11, %cst {dimension_numbers = #tpu.dot_dimension_numbers<[1], [0], [0], [1], [0, 0, 1, 1], [], []>} : vector<16x64xf32>, vector<64x128xf32>, vector<16x128xf32> -> vector<16x128xf32>
    %13 = arith.addf %8, %12 : vector<16x128xf32>
    %c1_11 = arith.constant 1 : index
    %c0_12 = arith.constant 0 : index
    %14 = vector.load %arg7[%c1_11, %c0_12] : memref<18x64xf32, #tpu.memory_space<vmem>>, vector<16x64xf32>
    %c1_13 = arith.constant 1 : index
    %c0_14 = arith.constant 0 : index
    %c0_15 = arith.constant 0 : index
    %15 = vector.load %arg2[%c1_13, %c0_14, %c0_15] : memref<3x64x128xf32, #tpu.memory_space<vmem>>, vector<1x64x128xf32>
    %16 = vector.shape_cast %15 : vector<1x64x128xf32> to vector<64x128xf32>
    %cst_16 = arith.constant dense<0.000000e+00> : vector<16x128xf32>
    %17 = tpu.matmul %14, %16, %cst_16 {dimension_numbers = #tpu.dot_dimension_numbers<[1], [0], [0], [1], [0, 0, 1, 1], [], []>} : vector<16x64xf32>, vector<64x128xf32>, vector<16x128xf32> -> vector<16x128xf32>
    %18 = arith.addf %13, %17 : vector<16x128xf32>
    %c2 = arith.constant 2 : index
    %c0_17 = arith.constant 0 : index
    %19 = vector.load %arg7[%c2, %c0_17] : memref<18x64xf32, #tpu.memory_space<vmem>>, vector<16x64xf32>
    %c2_18 = arith.constant 2 : index
    %c0_19 = arith.constant 0 : index
    %c0_20 = arith.constant 0 : index
    %20 = vector.load %arg2[%c2_18, %c0_19, %c0_20] : memref<3x64x128xf32, #tpu.memory_space<vmem>>, vector<1x64x128xf32>
    %21 = vector.shape_cast %20 : vector<1x64x128xf32> to vector<64x128xf32>
    %cst_21 = arith.constant dense<0.000000e+00> : vector<16x128xf32>
    %22 = tpu.matmul %19, %21, %cst_21 {dimension_numbers = #tpu.dot_dimension_numbers<[1], [0], [0], [1], [0, 0, 1, 1], [], []>} : vector<16x64xf32>, vector<64x128xf32>, vector<16x128xf32> -> vector<16x128xf32>
    %23 = arith.addf %18, %22 : vector<16x128xf32>
    %cst_22 = arith.constant 0.000000e+00 : f32
    %24 = vector.broadcast %cst_22 : f32 to vector<16x128xf32>
    %25 = arith.maximumf %23, %24 : vector<16x128xf32>
    %c1_23 = arith.constant 1 : index
    %c0_24 = arith.constant 0 : index
    %26 = vector.load %arg8[%c1_23, %c0_24] : memref<18x128xf32, #tpu.memory_space<vmem>>, vector<16x128xf32>
    tpu.vector_store %arg8[%c1_23, %c0_24], %25 {strides = array<i32>} : memref<18x128xf32, #tpu.memory_space<vmem>>, vector<16x128xf32>,
    %c0_25 = arith.constant 0 : index
    %c0_26 = arith.constant 0 : index
    %27 = vector.load %arg5[%c0_25, %c0_26] : memref<1x128xf32, #tpu.memory_space<vmem>>, vector<1x128xf32>
    %28 = vector.shape_cast %27 : vector<1x128xf32> to vector<1x128xf32>
    %29 = vector.broadcast %28 : vector<1x128xf32> to vector<16x128xf32>
    %c0_27 = arith.constant 0 : index
    %c0_28 = arith.constant 0 : index
    %30 = vector.load %arg8[%c0_27, %c0_28] : memref<18x128xf32, #tpu.memory_space<vmem>>, vector<16x128xf32>
    %c0_29 = arith.constant 0 : index
    %c0_30 = arith.constant 0 : index
    %c0_31 = arith.constant 0 : index
    %31 = vector.load %arg4[%c0_29, %c0_30, %c0_31] : memref<3x128x128xf32, #tpu.memory_space<vmem>>, vector<1x128x128xf32>
    %32 = vector.shape_cast %31 : vector<1x128x128xf32> to vector<128x128xf32>
    %cst_32 = arith.constant dense<0.000000e+00> : vector<16x128xf32>
    %33 = tpu.matmul %30, %32, %cst_32 {dimension_numbers = #tpu.dot_dimension_numbers<[1], [0], [0], [1], [0, 0, 1, 1], [], []>} : vector<16x128xf32>, vector<128x128xf32>, vector<16x128xf32> -> vector<16x128xf32>
    %34 = arith.addf %29, %33 : vector<16x128xf32>
    %c1_33 = arith.constant 1 : index
    %c0_34 = arith.constant 0 : index
    %35 = vector.load %arg8[%c1_33, %c0_34] : memref<18x128xf32, #tpu.memory_space<vmem>>, vector<16x128xf32>
    %c1_35 = arith.constant 1 : index
    %c0_36 = arith.constant 0 : index
    %c0_37 = arith.constant 0 : index
    %36 = vector.load %arg4[%c1_35, %c0_36, %c0_37] : memref<3x128x128xf32, #tpu.memory_space<vmem>>, vector<1x128x128xf32>
    %37 = vector.shape_cast %36 : vector<1x128x128xf32> to vector<128x128xf32>
    %cst_38 = arith.constant dense<0.000000e+00> : vector<16x128xf32>
    %38 = tpu.matmul %35, %37, %cst_38 {dimension_numbers = #tpu.dot_dimension_numbers<[1], [0], [0], [1], [0, 0, 1, 1], [], []>} : vector<16x128xf32>, vector<128x128xf32>, vector<16x128xf32> -> vector<16x128xf32>
    %39 = arith.addf %34, %38 : vector<16x128xf32>
    %c2_39 = arith.constant 2 : index
    %c0_40 = arith.constant 0 : index
    %40 = vector.load %arg8[%c2_39, %c0_40] : memref<18x128xf32, #tpu.memory_space<vmem>>, vector<16x128xf32>
    %c2_41 = arith.constant 2 : index
    %c0_42 = arith.constant 0 : index
    %c0_43 = arith.constant 0 : index
    %41 = vector.load %arg4[%c2_41, %c0_42, %c0_43] : memref<3x128x128xf32, #tpu.memory_space<vmem>>, vector<1x128x128xf32>
    %42 = vector.shape_cast %41 : vector<1x128x128xf32> to vector<128x128xf32>
    %cst_44 = arith.constant dense<0.000000e+00> : vector<16x128xf32>
    %43 = tpu.matmul %40, %42, %cst_44 {dimension_numbers = #tpu.dot_dimension_numbers<[1], [0], [0], [1], [0, 0, 1, 1], [], []>} : vector<16x128xf32>, vector<128x128xf32>, vector<16x128xf32> -> vector<16x128xf32>
    %44 = arith.addf %39, %43 : vector<16x128xf32>
    %cst_45 = arith.constant 0.000000e+00 : f32
    %45 = vector.broadcast %cst_45 : f32 to vector<16x128xf32>
    %46 = arith.maximumf %44, %45 : vector<16x128xf32>
    %c0_46 = arith.constant 0 : index
    %c0_47 = arith.constant 0 : index
    %c0_48 = arith.constant 0 : index
    %47 = vector.load %arg6[%c0_46, %c0_47, %c0_48] : memref<1x16x128xf32, #tpu.memory_space<vmem>>, vector<1x16x128xf32>
    %48 = vector.shape_cast %47 : vector<1x16x128xf32> to vector<16x128xf32>
    %49 = vector.shape_cast %46 : vector<16x128xf32> to vector<1x16x128xf32>
    tpu.vector_store %arg6[%c0_46, %c0_47, %c0_48], %49 {strides = array<i32>} : memref<1x16x128xf32, #tpu.memory_space<vmem>>, vector<1x16x128xf32>,
    return
  }
  func.func @transform_0(%arg0: i32) -> (i32, i32, i32) {
    %c0_i32 = arith.constant 0 : i32
    %c0_i32_0 = arith.constant 0 : i32
    %c0_i32_1 = arith.constant 0 : i32
    return %arg0, %c0_i32, %c0_i32_0 : i32, i32, i32
  }
  func.func @transform_1(%arg0: i32) -> (i32, i32, i32) {
    %c0_i32 = arith.constant 0 : i32
    %c0_i32_0 = arith.constant 0 : i32
    %c0_i32_1 = arith.constant 0 : i32
    %c0_i32_2 = arith.constant 0 : i32
    return %c0_i32, %c0_i32_0, %c0_i32_1 : i32, i32, i32
  }
  func.func @transform_2(%arg0: i32) -> (i32, i32) {
    %c0_i32 = arith.constant 0 : i32
    %c0_i32_0 = arith.constant 0 : i32
    %c0_i32_1 = arith.constant 0 : i32
    return %c0_i32, %c0_i32_0 : i32, i32
  }
  func.func @transform_3(%arg0: i32) -> (i32, i32, i32) {
    %c0_i32 = arith.constant 0 : i32
    %c0_i32_0 = arith.constant 0 : i32
    %c0_i32_1 = arith.constant 0 : i32
    %c0_i32_2 = arith.constant 0 : i32
    return %c0_i32, %c0_i32_0, %c0_i32_1 : i32, i32, i32
  }
  func.func @transform_4(%arg0: i32) -> (i32, i32) {
    %c0_i32 = arith.constant 0 : i32
    %c0_i32_0 = arith.constant 0 : i32
    %c0_i32_1 = arith.constant 0 : i32
    return %c0_i32, %c0_i32_0 : i32, i32
  }
  func.func @transform_5(%arg0: i32) -> (i32, i32, i32) {
    %c0_i32 = arith.constant 0 : i32
    %c0_i32_0 = arith.constant 0 : i32
    %c0_i32_1 = arith.constant 0 : i32
    return %arg0, %c0_i32, %c0_i32_0 : i32, i32, i32
  }
}

</mosaic_0001>

<bundles_post_ra>
// kernel: tile.10
= control target key start
LH: loop header
LB: loop body
LE: loop exit
PB: predicated region body
PF: predicated region fallthrough
CT: control target
= control target key end

     0   :  { %s28_s0 = inlined_call_operand.vmem [shape: f32[8], index: 0, kind: input, shape index: {}]   ;;  %s29_s1 = inlined_call_operand.vmem [shape: f32[16,8], index: 1, kind: output, shape index: {}]  }
   0x1   :  { %v4_v0 = vld [vmem:[%s28_s0] ss:$0 sm:$0xff] }
   0x2   :  { %5 = vst [vmem:[%s29_s1] sm:$0xff] %v4_v0  ;;  %8 = vst [vmem:[%s29_s1 + $0x8] sm:$0xff] %v4_v0 }

// kernel: tile.11
= control target key start
LH: loop header
LB: loop body
LE: loop exit
PB: predicated region body
PF: predicated region fallthrough
CT: control target
= control target key end

     0   :  { %s131_s10 = smov 120   ;;  %s132_s11 = smov 104   ;;  %vm3_vm0 = vcmask 64512   ;;  %vm9_vm1 = vcmask 1048512   ;;  %vm15_vm2 = vcmask 982912   ;;  %vm21_vm3 = vcmask 917312   ;;  %s207_s0 = inlined_call_operand.vmem [shape: f32[16,8], index: 0, kind: input, shape index: {}]   ;;  %s208_s1 = inlined_call_operand.vmem [shape: f32[1,128], index: 1, kind: output, shape index: {}]  }
   0x1   :  { %v101_v0 = vld [vmem:[%s207_s0 + $0xf] sm:$0x1]   ;;  %v103_v1 = vld [vmem:[%s207_s0 + $0xd] sm:$0x1]   ;;  %v102_v2 = vld [vmem:[%s207_s0 + $0xe] sm:$0x1]  }
   0x2   :  { %7 = vrot.lane.b32.xlu0 %v101_v0, %s131_s10  ;;  %19 = vrot.lane.b32.xlu1 %v103_v1, %s132_s11  ;;  %v104_v3 = vld [vmem:[%s207_s0 + $0xc] sm:$0x1]   ;;  %s133_s16 = smov 112   ;;  %s134_s17 = smov 96   ;;  %v105_v4 = vld [vmem:[%s207_s0 + $0xb] sm:$0x1]  }
   0x3   :  { %v106_v5 = vld [vmem:[%s207_s0 + $0xa] sm:$0x1]   ;;  %v2_v6 = vld [vmem:[%s207_s0] sm:$0x1]   ;;  %s135_s24 = smov 88   ;;  %s136_s25 = smov 80  }
   0x4   :  { %4 = vst.msk [vmem:[#allocation0] sm:$0x1] %vm3_vm0, %v2_v6   ;;  %v107_v7 = vld [vmem:[%s207_s0 + $0x9] sm:$0x1]   ;;  %v108_v8 = vld [vmem:[%s207_s0 + $0x8] sm:$0x1]  }
   0x5   :  { %s137_s30 = smov 72   ;;  %s138_s2 = smov 64   ;;  %v109_v9 = vld [vmem:[%s207_s0 + $0x7] sm:$0x1]   ;;  %v110_v10 = vld [vmem:[%s207_s0 + $0x6] sm:$0x1]  }
   0x6   :  { %13 = vrot.lane.b32.xlu0 %v102_v2, %s133_s16  ;;  %25 = vrot.lane.b32.xlu1 %v104_v3, %s134_s17  ;;  %s139_s7 = smov 56   ;;  %s140_s8 = smov 48   ;;  %v111_v11 = vld [vmem:[%s207_s0 + $0x5] sm:$0x1]   ;;  %v112_v12 = vld [vmem:[%s207_s0 + $0x4] sm:$0x1]  }
   0x7   :  { %s141_s13 = smov 40   ;;  %s142_s14 = smov 32   ;;  %v113_v13 = vld [vmem:[%s207_s0 + $0x3] sm:$0x1]   ;;  %v114_v14 = vld [vmem:[%s207_s0 + $0x2] sm:$0x1]  }
   0x8   :  { %s143_s19 = smov 24   ;;  %s144_s20 = smov 16   ;;  %v115_v15 = vld [vmem:[%s207_s0 + $0x1] sm:$0x1]   ;;  %vm27_vm4 = vcmask 851712   ;;  %vm33_vm5 = vcmask 786112  }
   0x9   :  { %s145_s0 = smov 8   ;;  %vm39_vm6 = vcmask 720512   ;;  %vm45_vm7 = vcmask 654912   ;;  %vm51_vm8 = vcmask 589312   ;;  %vm57_vm9 = vcmask 523712  }
   0xa   :  { %31 = vrot.lane.b32.xlu0 %v105_v4, %s135_s24  ;;  %37 = vrot.lane.b32.xlu1 %v106_v5, %s136_s25  ;;  %vm63_vm10 = vcmask 458112   ;;  %vm69_vm11 = vcmask 392512   ;;  %vm75_vm12 = vcmask 326912   ;;  %vm81_vm13 = vcmask 261312  }
   0xb   :  { %vm87_vm14 = vcmask 195712   ;;  %vm93_vm15 = vcmask 130112  }
   0xe   :  { %43 = vrot.lane.b32.xlu0 %v107_v7, %s137_s30  ;;  %49 = vrot.lane.b32.xlu1 %v108_v8, %s138_s2 }
  0x12   :  { %55 = vrot.lane.b32.xlu0 %v109_v9, %s139_s7  ;;  %61 = vrot.lane.b32.xlu1 %v110_v10, %s140_s8 }
  0x16   :  { %67 = vrot.lane.b32.xlu0 %v111_v11, %s141_s13  ;;  %73 = vrot.lane.b32.xlu1 %v112_v12, %s142_s14 }
  0x1a   :  { %79 = vrot.lane.b32.xlu0 %v113_v13, %s143_s19  ;;  %85 = vrot.lane.b32.xlu1 %v114_v14, %s144_s20 }
  0x1e   :  { %91 = vrot.lane.b32.xlu0 %v115_v15, %s145_s0 }
  0x74   :  { %v8_v16 = vpop.permute.xlu0 %7   ;;  %v20_v17 = vpop.permute.xlu1 %19  }
  0x75   :  { %10 = vst.msk [vmem:[#allocation0] sm:$0x1] %vm9_vm1, %v8_v16  }
  0x78   :  { %v14_v18 = vpop.permute.xlu0 %13   ;;  %v26_v19 = vpop.permute.xlu1 %25  }
  0x79   :  { %16 = vst.msk [vmem:[#allocation0] sm:$0x1] %vm15_vm2, %v14_v18  }
  0x7a   :  { %22 = vst.msk [vmem:[#allocation0] sm:$0x1] %vm21_vm3, %v20_v17  }
  0x7b   :  { %28 = vst.msk [vmem:[#allocation0] sm:$0x1] %vm27_vm4, %v26_v19  }
  0x7c   :  { %v32_v20 = vpop.permute.xlu0 %31   ;;  %v38_v21 = vpop.permute.xlu1 %37  }
  0x7d   :  { %34 = vst.msk [vmem:[#allocation0] sm:$0x1] %vm33_vm5, %v32_v20  }
  0x7e   :  { %40 = vst.msk [vmem:[#allocation0] sm:$0x1] %vm39_vm6, %v38_v21  }
  0x80   :  { %v44_v22 = vpop.permute.xlu0 %43   ;;  %v50_v23 = vpop.permute.xlu1 %49  }
  0x81   :  { %46 = vst.msk [vmem:[#allocation0] sm:$0x1] %vm45_vm7, %v44_v22  }
  0x82   :  { %52 = vst.msk [vmem:[#allocation0] sm:$0x1] %vm51_vm8, %v50_v23  }
  0x84   :  { %v56_v24 = vpop.permute.xlu0 %55   ;;  %v62_v25 = vpop.permute.xlu1 %61  }
  0x85   :  { %58 = vst.msk [vmem:[#allocation0] sm:$0x1] %vm57_vm9, %v56_v24  }
  0x86   :  { %64 = vst.msk [vmem:[#allocation0] sm:$0x1] %vm63_vm10, %v62_v25  }
  0x88   :  { %v68_v26 = vpop.permute.xlu0 %67   ;;  %v74_v27 = vpop.permute.xlu1 %73  }
  0x89   :  { %70 = vst.msk [vmem:[#allocation0] sm:$0x1] %vm69_vm11, %v68_v26  }
  0x8a   :  { %76 = vst.msk [vmem:[#allocation0] sm:$0x1] %vm75_vm12, %v74_v27  }
  0x8c   :  { %v80_v28 = vpop.permute.xlu0 %79   ;;  %v86_v29 = vpop.permute.xlu1 %85  }
  0x8d   :  { %82 = vst.msk [vmem:[#allocation0] sm:$0x1] %vm81_vm13, %v80_v28  }
  0x8e   :  { %88 = vst.msk [vmem:[#allocation0] sm:$0x1] %vm87_vm14, %v86_v29  }
  0x90   :  { %v92_v30 = vpop.permute.xlu0 %91  }
  0x91   :  { %94 = vst.msk [vmem:[#allocation0] sm:$0x1] %vm93_vm15, %v92_v30  }
  0x98   :  { %v98_v31 = vld [vmem:[#allocation0] sm:$0x1] }
  0x99   :  { %100 = vst [vmem:[%s208_s1] sm:$0x1] %v98_v31 }

// kernel: double_conv.1
= control target key start
LH: loop header
LB: loop body
LE: loop exit
PB: predicated region body
PF: predicated region fallthrough
CT: control target
= control target key end

     0   :  { %s1407_s18 = smov 0   ;;  %s1658_s0 = inlined_call_operand.vmem [shape: f32[2,16,64], index: 0, kind: input, shape index: {}]   ;;  %s1659_s1 = inlined_call_operand.vmem [shape: f32[3,64,128], index: 1, kind: input, shape index: {}]   ;;  %s1660_s2 = inlined_call_operand.vmem [shape: f32[1,128], index: 2, kind: input, shape index: {}]   ;;  %s1661_s3 = inlined_call_operand.vmem [shape: f32[3,128,128], index: 3, kind: input, shape index: {}]   ;;  %s1662_s4 = inlined_call_operand.vmem [shape: f32[1,128], index: 4, kind: input, shape index: {}]   ;;  %s1663_s5 = inlined_call_operand.vmem [shape: f32[2,16,128], index: 5, kind: output, shape index: {}]  }
   0x1 LB: > { %s887_s19 = sadd.s32 4294967295, %s1374_s18   ;;  %p891_p0 = scmp.ge.s32.totalorder %s1374_s18, 1  ;;  %s1374_s18 = sphi %s1407_s18, %s15_s18  }
   0x2   : > { %p187_p1 = scmp.lt.s32.totalorder %s1374_s18, 3 }
   0x4   : > { %p188_p2 = pnand %p891_p0, %p187_p1 }
   0x5   : > { %p215_p3 = scmp.lt.s32.totalorder (!%p188_p2), %s887_s19, 1  ;;  %p896_p4 = scmp.ne.s32.totalorder (!%p188_p2), %s887_s19, 0 }
   0x6   : > { %191 = sbr.rel (%p188_p2) target bundleno = 540 (0x21c), region = 40 }
   0xd   : > { %s216_s20 = scalar_select %p215_p3, %s887_s19, 1 }
   0xe   : > { %228 = sbr.rel (%p896_p4) target bundleno = 21 (0x15), region = 44  ;;  %vm229_vm0 = vcmask (!%p896_p4), 523264   ;;  %vm232_vm1 = vcmask (!%p896_p4), 517120   ;;  %v1376_v0 = vmov (!%p896_p4), 0.0  }
   0xf   : > { %s955_s21 = sshll.u32 %s216_s20, 4  ;;  %230 = vst.msk [vmem:[#allocation2] sm:$0xff] (!%p896_p4), %vm229_vm0, %v1376_v0  ;;  %231 = vst.msk [vmem:[#allocation2 + $0x8] sm:$0xff] (!%p896_p4), %vm229_vm0, %v1376_v0 }
  0x10   : > { %s219_s24 = scalar_lea.vmem %s1658_s0, %s955_s21  ;;  %s1421_s27 = scalar_lea.vmem %s1663_s5, %s955_s21  ;;  %234 = vst [vmem:[#allocation3] sm:$0xff] (!%p896_p4), %v1376_v0  ;;  %235 = vst [vmem:[#allocation3 + $0x8] sm:$0xff] (!%p896_p4), %v1376_v0 }
  0x11   : > { %236 = vst [vmem:[#allocation3 + $0x10] sm:$0x3] (!%p896_p4), %v1376_v0  ;;  %233 = vst.msk [vmem:[#allocation2 + $0x10] sm:$0x3] (!%p896_p4), %vm232_vm1, %v1376_v0 }
  0x15 PF: > { %v251_v1 = vld [vmem:[%s1659_s1] sm:$0xff]  ;;  %v252_v2 = vld [vmem:[%s1659_s1 + $0x8] sm:$0xff]  ;;  %v253_v3 = vld [vmem:[%s1659_s1 + $0x10] sm:$0xff]  ;;  %vm239_vm2 = vcmask 523264  }
  0x16   : > { %v1203_v4 = vpack.c.bf16 %v252_v2, %v251_v1  ;;  %v254_v5 = vld [vmem:[%s1659_s1 + $0x18] sm:$0xff]  ;;  %v255_v7 = vld [vmem:[%s1659_s1 + $0x20] sm:$0xff]  ;;  %v256_v8 = vld [vmem:[%s1659_s1 + $0x28] sm:$0xff] }
  0x17   : > { %v1207_v6 = vpack.c.bf16 %v254_v5, %v253_v3  ;;  %v237_v9 = vld [vmem:[%s219_s24] sm:$0xff]  ;;  %v238_v10 = vld [vmem:[%s219_s24 + $0x8] sm:$0xff]  ;;  %v1211_v11 = vpack.c.bf16 %v256_v8, %v255_v7  ;;  %v257_v12 = vld [vmem:[%s1659_s1 + $0x30] sm:$0xff] }
  0x18   : > { %1204 = vmatprep.subr.bf16.mxu0 %v1203_v4  ;;  %240 = vst.msk [vmem:[#allocation2 + $0x1] sm:$0xff] %vm239_vm2, %v237_v9  ;;  %241 = vst.msk [vmem:[#allocation2 + $0x9] sm:$0xff] %vm239_vm2, %v238_v10  ;;  %v258_v13 = vld [vmem:[%s1659_s1 + $0x38] sm:$0xff]  ;;  %v921_v14 = vld [vmem:[%s1661_s3 + $0x80] sm:$0xff] }
  0x19   : > { %1206 = vmatpush3.bf16.msra.mxu0 %v1203_v4  ;;  %v1215_v15 = vpack.c.bf16 %v258_v13, %v257_v12  ;;  %v900_v16 = vld [vmem:[%s1659_s1 + $0x40] sm:$0xff]  ;;  %v922_v17 = vld [vmem:[%s1661_s3 + $0x88] sm:$0xff]  ;;  %v923_v21 = vld [vmem:[%s1661_s3 + $0x90] sm:$0xff] }
  0x1a   : > { %1208 = vmatprep.subr.bf16.mxu0 %v1207_v6  ;;  %v901_v19 = vld [vmem:[%s1659_s1 + $0x48] sm:$0xff]  ;;  %v1283_v20 = vpack.c.bf16 %v922_v17, %v921_v14  ;;  %v924_v22 = vld [vmem:[%s1661_s3 + $0x98] sm:$0xff]  ;;  %v925_v25 = vld [vmem:[%s1661_s3 + $0xa0] sm:$0xff] }
  0x1b   : > { %v1219_v23 = vpack.c.bf16 %v901_v19, %v900_v16  ;;  %v1287_v24 = vpack.c.bf16 %v924_v22, %v923_v21  ;;  %v926_v26 = vld [vmem:[%s1661_s3 + $0xa8] sm:$0xff]  ;;  %v902_v27 = vld [vmem:[%s1659_s1 + $0x50] sm:$0xff]  ;;  %v903_v28 = vld [vmem:[%s1659_s1 + $0x58] sm:$0xff] }
  0x1c   : > { %1284 = vmatprep.subr.bf16.mxu1 %v1283_v20  ;;  %v1291_v29 = vpack.c.bf16 %v926_v26, %v925_v25  ;;  %v927_v30 = vld [vmem:[%s1661_s3 + $0xb0] sm:$0xff]  ;;  %v928_v31 = vld [vmem:[%s1661_s3 + $0xb8] sm:$0xff]  ;;  %v1223_v33 = vpack.c.bf16 %v903_v28, %v902_v27  ;;  %v904_v35 = vld [vmem:[%s1659_s1 + $0x60] sm:$0xff] }
  0x1d   : > { %1210 = vmatpush3.bf16.msra.mxu0 %v1207_v6  ;;  %1286 = vmatpush3.bf16.msra.mxu1 %v1283_v20  ;;  %v905_v36 = vld [vmem:[%s1659_s1 + $0x68] sm:$0xff]  ;;  %v1295_v37 = vpack.c.bf16 %v928_v31, %v927_v30  ;;  %v929_v38 = vld [vmem:[%s1661_s3 + $0xc0] sm:$0xff]  ;;  %v906_v41 = vld [vmem:[%s1659_s1 + $0x70] sm:$0xff] }
  0x1e   : > { %1212 = vmatprep.subr.bf16.mxu0 %v1211_v11  ;;  %1288 = vmatprep.subr.bf16.mxu1 %v1287_v24  ;;  %v930_v39 = vld [vmem:[%s1661_s3 + $0xc8] sm:$0xff]  ;;  %v1227_v40 = vpack.c.bf16 %v905_v36, %v904_v35  ;;  %v907_v42 = vld [vmem:[%s1659_s1 + $0x78] sm:$0xff]  ;;  %v910_v45 = vld [vmem:[%s1659_s1 + $0x80] sm:$0xff] }
  0x1f   : > { %v249_v18 = vld [vmem:[#allocation2] sm:$0xff]  ;;  %v250_v32 = vld [vmem:[#allocation2 + $0x8] sm:$0xff]  ;;  %v1299_v43 = vpack.c.bf16 %v930_v39, %v929_v38  ;;  %v1231_v44 = vpack.c.bf16 %v907_v42, %v906_v41  ;;  %v912_v48 = vld [vmem:[%s1659_s1 + $0x90] sm:$0xff] }
  0x20   : > { %1057 = vmatprep.mubr.msk.f32.mxu0 %vm239_vm2, %v249_v18  ;;  %v342_v34 = vld [vmem:[#allocation2 + $0x1] sm:$0xff]  ;;  %v913_v49 = vld [vmem:[%s1659_s1 + $0x98] sm:$0xff]  ;;  %v343_v50 = vld [vmem:[#allocation2 + $0x9] sm:$0xff] }
  0x21   : > { %1214 = vmatpush3.bf16.msra.mxu0 %v1211_v11  ;;  %1290 = vmatpush3.bf16.msra.mxu1 %v1287_v24  ;;  %v911_v46 = vld [vmem:[%s1659_s1 + $0x88] sm:$0xff]  ;;  %v1239_v51 = vpack.c.bf16 %v913_v49, %v912_v48  ;;  %v914_v53 = vld [vmem:[%s1659_s1 + $0xa0] sm:$0xff]  ;;  %v916_v56 = vld [vmem:[%s1659_s1 + $0xb0] sm:$0xff] }
  0x22   : > { %1216 = vmatprep.subr.bf16.mxu0 %v1215_v15  ;;  %1292 = vmatprep.subr.bf16.mxu1 %v1291_v29  ;;  %v1235_v47 = vpack.c.bf16 %v911_v46, %v910_v45  ;;  %v436_v52 = vld [vmem:[#allocation2 + $0x2] sm:$0xff]  ;;  %v917_v57 = vld [vmem:[%s1659_s1 + $0xb8] sm:$0xff]  ;;  %v545_v62 = vld [vmem:[%s1661_s3 + $0x10] sm:$0xff] }
  0x23   : > { %v915_v54 = vld [vmem:[%s1659_s1 + $0xa8] sm:$0xff]  ;;  %v1247_v58 = vpack.c.bf16 %v917_v57, %v916_v56  ;;  %v543_v59 = vld [vmem:[%s1661_s3] sm:$0xff]  ;;  %v546_v63 = vld [vmem:[%s1661_s3 + $0x18] sm:$0xff] }
  0x24   : > { %v1243_v55 = vpack.c.bf16 %v915_v54, %v914_v53  ;;  %v544_v60 = vld [vmem:[%s1661_s3 + $0x8] sm:$0xff]  ;;  %v1255_v1 = vpack.c.bf16 %v546_v63, %v545_v62  ;;  %v547_v2 = vld [vmem:[%s1661_s3 + $0x20] sm:$0xff]  ;;  %v549_v5 = vld [vmem:[%s1661_s3 + $0x30] sm:$0xff] }
  0x25   : > { %1218 = vmatpush3.bf16.msra.mxu0 %v1215_v15  ;;  %1294 = vmatpush3.bf16.msra.mxu1 %v1291_v29  ;;  %v1251_v61 = vpack.c.bf16 %v544_v60, %v543_v59  ;;  %v437_v0 = vld [vmem:[#allocation2 + $0xa] sm:$0xff]  ;;  %v550_v6 = vld [vmem:[%s1661_s3 + $0x38] sm:$0xff]  ;;  %v551_v8 = vld [vmem:[%s1661_s3 + $0x40] sm:$0xff] }
  0x26   : > { %1220 = vmatprep.subr.bf16.mxu0 %v1219_v23  ;;  %1296 = vmatprep.subr.bf16.mxu1 %v1295_v37  ;;  %v548_v3 = vld [vmem:[%s1661_s3 + $0x28] sm:$0xff]  ;;  %v1263_v7 = vpack.c.bf16 %v550_v6, %v549_v5  ;;  %v931_v11 = vld [vmem:[%s1661_s3 + $0xd0] sm:$0xff]  ;;  %v932_v12 = vld [vmem:[%s1661_s3 + $0xd8] sm:$0xff] }
  0x27   : > { %v1259_v4 = vpack.c.bf16 %v548_v3, %v547_v2  ;;  %v552_v9 = vld [vmem:[%s1661_s3 + $0x48] sm:$0xff]  ;;  %v1303_v13 = vpack.c.bf16 %v932_v12, %v931_v11  ;;  %v933_v14 = vld [vmem:[%s1661_s3 + $0xe0] sm:$0xff]  ;;  %v935_v17 = vld [vmem:[%s1661_s3 + $0xf0] sm:$0xff] }
  0x28   : > { %1058 = vmatmul.mubr.msk.f32.vlgmr.msra.gmra.mrb[0].mxu0 %vm239_vm2, %v250_v32  ;;  %v1267_v10 = vpack.c.bf16 %v552_v9, %v551_v8  ;;  %v934_v15 = vld [vmem:[%s1661_s3 + $0xe8] sm:$0xff]  ;;  %v936_v18 = vld [vmem:[%s1661_s3 + $0xf8] sm:$0xff]  ;;  %v553_v19 = vld [vmem:[%s1661_s3 + $0x50] sm:$0xff] }
  0x29   : > { %1222 = vmatpush3.bf16.msra.mxu0 %v1219_v23  ;;  %1076 = vmatprep.mubr.msk.f32.mxu0 %vm239_vm2, %v342_v34  ;;  %v1307_v16 = vpack.c.bf16 %v934_v15, %v933_v14  ;;  %v554_v20 = vld [vmem:[%s1661_s3 + $0x58] sm:$0xff]  ;;  %v1311_v21 = vpack.c.bf16 %v936_v18, %v935_v17  ;;  %v937_v23 = vld [vmem:[%s1661_s3 + $0x100] sm:$0xff]  ;;  %v938_v24 = vld [vmem:[%s1661_s3 + $0x108] sm:$0xff] }
  0x2a   : > { %1224 = vmatprep.subr.bf16.mxu0 %v1223_v33  ;;  %1298 = vmatpush3.bf16.msra.mxu1 %v1295_v37  ;;  %v1271_v22 = vpack.c.bf16 %v554_v20, %v553_v19  ;;  %v555_v25 = vld [vmem:[%s1661_s3 + $0x60] sm:$0xff]  ;;  %v556_v26 = vld [vmem:[%s1661_s3 + $0x68] sm:$0xff]  ;;  %v1315_v27 = vpack.c.bf16 %v938_v24, %v937_v23  ;;  %v557_v29 = vld [vmem:[%s1661_s3 + $0x70] sm:$0xff] }
  0x2b   : > { %1300 = vmatprep.subr.bf16.mxu1 %v1299_v43  ;;  %v1275_v28 = vpack.c.bf16 %v556_v26, %v555_v25  ;;  %v558_v30 = vld [vmem:[%s1661_s3 + $0x78] sm:$0xff]  ;;  %v897_v32 = vld [vmem:[%s1660_s2] ss:$0 sm:$0xff]  ;;  %v939_v37 = vld [vmem:[%s1661_s3 + $0x110] sm:$0xff] }
  0x2c   : > { %v1279_v31 = vpack.c.bf16 %v558_v30, %v557_v29  ;;  %v940_v38 = vld [vmem:[%s1661_s3 + $0x118] sm:$0xff]  ;;  %v941_v42 = vld [vmem:[%s1661_s3 + $0x120] sm:$0xff]  ;;  %v943_v45 = vld [vmem:[%s1661_s3 + $0x130] sm:$0xff] }
  0x2d   : > { %1226 = vmatpush3.bf16.msra.mxu0 %v1223_v33  ;;  %v1319_v41 = vpack.c.bf16 %v940_v38, %v939_v37  ;;  %v944_v46 = vld [vmem:[%s1661_s3 + $0x138] sm:$0xff]  ;;  %v947_v54 = vld [vmem:[%s1661_s3 + $0x150] sm:$0xff]  ;;  %v949_v57 = vld [vmem:[%s1661_s3 + $0x160] sm:$0xff] }
  0x2e   : > { %1228 = vmatprep.subr.bf16.mxu0 %v1227_v40  ;;  %1302 = vmatpush3.bf16.msra.mxu1 %v1299_v43  ;;  %v942_v43 = vld [vmem:[%s1661_s3 + $0x128] sm:$0xff]  ;;  %v951_v60 = vld [vmem:[%s1661_s3 + $0x170] sm:$0xff]  ;;  %v920_v2 = vld [vmem:[%s1662_s4] ss:$0 sm:$0xff] }
  0x2f   : > { %1304 = vmatprep.subr.bf16.mxu1 %v1303_v13 }
  0x31   : > { %1230 = vmatpush3.bf16.msra.mxu0 %v1227_v40 }
  0x32   : > { %1232 = vmatprep.subr.bf16.mxu0 %v1231_v44  ;;  %1306 = vmatpush3.bf16.msra.mxu1 %v1303_v13 }
  0x33   : > { %1308 = vmatprep.subr.bf16.mxu1 %v1307_v16 }
  0x35   : > { %1234 = vmatpush3.bf16.msra.mxu0 %v1231_v44  ;;  %v1323_v44 = vpack.c.bf16 %v942_v43, %v941_v42 }
  0x36   : > { %1236 = vmatprep.subr.bf16.mxu0 %v1235_v47  ;;  %1310 = vmatpush3.bf16.msra.mxu1 %v1307_v16 }
  0x37   : > { %1312 = vmatprep.subr.bf16.mxu1 %v1311_v21 }
  0x38   : > { %1077 = vmatmul.mubr.msk.f32.vlgmr.msra.gmra.mrb[0].mxu0 %vm239_vm2, %v343_v50  ;;  %v1327_v50 = vpack.c.bf16 %v944_v46, %v943_v45 }
  0x39   : > { %1238 = vmatpush3.bf16.msra.mxu0 %v1235_v47  ;;  %1095 = vmatprep.mubr.msk.f32.mxu0 %vm239_vm2, %v436_v52  ;;  %v946_v52 = vld [vmem:[%s1661_s3 + $0x148] sm:$0xff] }
  0x3a   : > { %1240 = vmatprep.subr.bf16.mxu0 %v1239_v51  ;;  %1314 = vmatpush3.bf16.msra.mxu1 %v1311_v21 }
  0x3b   : > { %1316 = vmatprep.subr.bf16.mxu1 %v1315_v27 }
  0x3d   : > { %1242 = vmatpush3.bf16.msra.mxu0 %v1239_v51  ;;  %v945_v51 = vld [vmem:[%s1661_s3 + $0x140] sm:$0xff] }
  0x3e   : > { %1244 = vmatprep.subr.bf16.mxu0 %v1243_v55  ;;  %v1331_v53 = vpack.c.bf16 %v946_v52, %v945_v51 }
  0x41   : > { %1246 = vmatpush3.bf16.msra.mxu0 %v1243_v55  ;;  %v948_v55 = vld [vmem:[%s1661_s3 + $0x158] sm:$0xff] }
  0x42   : > { %1248 = vmatprep.subr.bf16.mxu0 %v1247_v58  ;;  %v1335_v56 = vpack.c.bf16 %v948_v55, %v947_v54 }
  0x45   : > { %1250 = vmatpush3.bf16.msra.mxu0 %v1247_v58  ;;  %v950_v58 = vld [vmem:[%s1661_s3 + $0x168] sm:$0xff] }
  0x46   : > { %1252 = vmatprep.subr.bf16.mxu0 %v1251_v61  ;;  %v1339_v59 = vpack.c.bf16 %v950_v58, %v949_v57 }
  0x48   : > { %1096 = vmatmul.mubr.msk.f32.vlgmr.msra.gmra.mrb[0].mxu0 %vm239_vm2, %v437_v0 }
  0x49   : > { %1254 = vmatpush3.bf16.msra.mxu0 %v1251_v61  ;;  %v952_v61 = vld [vmem:[%s1661_s3 + $0x178] sm:$0xff] }
  0x4a   : > { %1256 = vmatprep.subr.bf16.mxu0 %v1255_v1  ;;  %v1343_v62 = vpack.c.bf16 %v952_v61, %v951_v60 }
  0x4d   : > { %1258 = vmatpush3.bf16.msra.mxu0 %v1255_v1 }
  0x4e   : > { %1260 = vmatprep.subr.bf16.mxu0 %v1259_v4 }
  0x51   : > { %1262 = vmatpush3.bf16.msra.mxu0 %v1259_v4 }
  0x52   : > { %1264 = vmatprep.subr.bf16.mxu0 %v1263_v7 }
  0x55   : > { %1266 = vmatpush3.bf16.msra.mxu0 %v1263_v7 }
  0x56   : > { %1268 = vmatprep.subr.bf16.mxu0 %v1267_v10 }
  0x59   : > { %1270 = vmatpush3.bf16.msra.mxu0 %v1267_v10 }
  0x5a   : > { %1272 = vmatprep.subr.bf16.mxu0 %v1271_v22 }
  0x5d   : > { %1274 = vmatpush3.bf16.msra.mxu0 %v1271_v22 }
  0x5e   : > { %1276 = vmatprep.subr.bf16.mxu0 %v1275_v28 }
  0x61   : > { %1278 = vmatpush3.bf16.msra.mxu0 %v1275_v28 }
  0x62   : > { %1280 = vmatprep.subr.bf16.mxu0 %v1279_v31 }
  0x65   : > { %1282 = vmatpush3.bf16.msra.mxu0 %v1279_v31 }
 0x11b   : > { %v1097_v33 = vpop.f32.mrb[0].mxu0 }
 0x11c   : > { %v1347_v34 = vadd.f32 %v1097_v33, %v897_v32  ;;  %v519_v35 = vpop.f32.mrb[1].mxu0 }
 0x11d   : > { %v1348_v36 = vadd.f32 %v897_v32, %v519_v35 }
 0x11e   : > { %v531_v39 = vmax.f32 %v1347_v34, 0.0 }
 0x11f   : > { %v530_v40 = vmax.f32 %v1348_v36, 0.0 }
 0x120   : > { %533 = vst [vmem:[#allocation3 + $0x9] sm:$0xff] %v531_v39 }
 0x121   : > { %532 = vst [vmem:[#allocation3 + $0x1] sm:$0xff] %v530_v40  ;;  %1165 = vmatprep.mubr.f32.mxu1 %v530_v40 }
 0x122   : > { %1166 = vmatmul.mubr.f32.vlgmr.msra.gmra.mrb[0].mxu1 %v531_v39 }
 0x123   : > { %1318 = vmatpush3.bf16.msra.mxu1 %v1315_v27 }
 0x124   : > { %1320 = vmatprep.subr.bf16.mxu1 %v1319_v41 }
 0x127   : > { %1322 = vmatpush3.bf16.msra.mxu1 %v1319_v41  ;;  %v733_v63 = vld [vmem:[#allocation3 + $0xa] sm:$0xff] }
 0x128   : > { %v541_v47 = vld [vmem:[#allocation3] sm:$0xff]  ;;  %v542_v48 = vld [vmem:[#allocation3 + $0x8] sm:$0xff]  ;;  %1324 = vmatprep.subr.bf16.mxu1 %v1323_v44 }
 0x129   : > { %v732_v49 = vld [vmem:[#allocation3 + $0x2] sm:$0xff]  ;;  %1130 = vmatprep.mubr.f32.mxu0 %v541_v47 }
 0x12a   : > { %1200 = vmatprep.mubr.f32.mxu1 %v732_v49  ;;  %1131 = vmatmul.mubr.f32.vlgmr.msra.gmra.mrb[2].mxu0 %v542_v48 }
 0x12b   : > { %1326 = vmatpush3.bf16.msra.mxu1 %v1323_v44 }
 0x12c   : > { %1328 = vmatprep.subr.bf16.mxu1 %v1327_v50 }
 0x12f   : > { %1330 = vmatpush3.bf16.msra.mxu1 %v1327_v50 }
 0x130   : > { %1332 = vmatprep.subr.bf16.mxu1 %v1331_v53 }
 0x133   : > { %1334 = vmatpush3.bf16.msra.mxu1 %v1331_v53 }
 0x134   : > { %1336 = vmatprep.subr.bf16.mxu1 %v1335_v56 }
 0x137   : > { %1338 = vmatpush3.bf16.msra.mxu1 %v1335_v56 }
 0x138   : > { %1340 = vmatprep.subr.bf16.mxu1 %v1339_v59 }
 0x13b   : > { %1342 = vmatpush3.bf16.msra.mxu1 %v1339_v59 }
 0x13c   : > { %1344 = vmatprep.subr.bf16.mxu1 %v1343_v62 }
 0x13f   : > { %1346 = vmatpush3.bf16.msra.mxu1 %v1343_v62 }
 0x142   : > { %1201 = vmatmul.mubr.f32.vlgmr.msra.gmra.mrb[0].mxu1 %v733_v63 }
 0x1fd   : > { %v1132_v0 = vpop.f32.mrb[2].mxu0 }
 0x1fe   : > { %v625_v1 = vpop.f32.mrb[3].mxu0  ;;  %v635_v3 = vadd.f32 %v1132_v0, %v920_v2 }
 0x1ff   : > { %v634_v4 = vadd.f32 %v920_v2, %v625_v1 }
 0x215   : > { %v1202_v5 = vpop.f32.mrb[0].mxu1 }
 0x216   : > { %v1350_v6 = vadd.f32 %v1202_v5, %v635_v3  ;;  %v817_v7 = vpop.f32.mrb[1].mxu1 }
 0x217   : > { %v1352_v8 = vadd.f32 %v817_v7, %v634_v4 }
 0x218   : > { %v829_v9 = vmax.f32 %v1350_v6, 0.0 }
 0x219   : > { %v828_v10 = vmax.f32 %v1352_v8, 0.0 }
 0x21a   : > { %831 = vst [vmem:[%s1421_s27 + $0x8] sm:$0xff] %v829_v9 }
 0x21b   : > { %830 = vst [vmem:[%s1421_s27] sm:$0xff] %v828_v10 }
 0x21c PF: > { %s15_s18 = sadd.s32 1, %s1374_s18  }
 0x21d   : > { %p12_p5 = scmp.ge.s32.totalorder %s15_s18, 4  }
 0x21f   :  { %14 = sbr.rel (!%p12_p5) target bundleno = 1 (0x1), region = 78 }

</bundles_post_ra>
